<compile_context>
chip_gen: v7x
topology: tpu7x:2x2x1
jax: 0.10.0
libtpu: 0.0.40
codegen_flags: <defaults>
</compile_context>

<pallas_src>
import functools

import jax
import jax.numpy as jnp
from jax.experimental import pallas as pl
from jax.experimental.pallas import tpu as pltpu


# str_to_activation equivalents.  torch.nn.GELU defaults to the exact erf
# form, so pass approximate=False for parity.
_ACTIVATIONS = {
    "relu": lambda h: jnp.maximum(h, 0.0),
    "lrelu": lambda h: jnp.where(h >= 0.0, h, 0.01 * h),
    "gelu": functools.partial(jax.nn.gelu, approximate=False),
    "elu": jax.nn.elu,
    "swish": jax.nn.silu,
}


def _round_up(v: int, m: int) -> int:
    return (v + m - 1) // m * m


def _product_mlp_kernel(*refs, depth: int, activation: str):
    """refs = (x_ref, t_ref, W0x, w0t, b0, W1, b1, ..., W_{d-1}, b_{d-1}, o_ref)."""
    x_ref, t_ref = refs[0], refs[1]
    o_ref = refs[-1]
    wb = refs[2:-1]
    act = _ACTIVATIONS[activation]

    x = x_ref[...]                                   # (TB, k*dim), compute dtype
    t = t_ref[...]                                   # (TB, 1), f32

    # Layer 0: [x | t] @ W0 + b0 == x @ W0[:k*dim] + t * W0[k*dim] + b0
    h = jnp.dot(x, wb[0][...], preferred_element_type=jnp.float32)
    h = h + t * wb[1][...] + wb[2][...]              # f32 accumulate / bias / t-row
    if depth > 1:
        h = act(h)

    for i in range(1, depth):                        # static unroll over layers
        w = wb[2 * i + 1][...]                       # (prev, out), compute dtype
        b = wb[2 * i + 2][...]                       # (1, out), f32
        h = jnp.dot(h.astype(w.dtype), w, preferred_element_type=jnp.float32) + b
        if i < depth - 1:
            h = act(h)

    o_ref[...] = h.astype(o_ref.dtype)               # true-width store (masked is fine)


def _choose_batch_tile(B: int, block_b: int, sub: int) -> int:
    """Pick a batch tile: big (amortize per-step overhead) but giving the grid
    at least 2 steps when possible (v7x megacore, DMA/compute overlap)."""
    if B <= sub:
        return B                                     # equals full array dim -> legal
    half = -(-B // 2)
    return max(sub, min(block_b, _round_up(half, sub)))


def product_mlp_forward(x, t, params, *, tangent: bool = False,
                        activation: str = "relu", block_b: int = 4096,
                        compute_dtype=jnp.float32):
    """Equivalent of ProductMLP(...).forward(x, t).

    params: list of (W, b) per Linear layer with W of shape (in, out)
            (i.e. nn.Linear.weight.T) and b of shape (out,).
    """
    B = x.shape[0]
    dim = x.shape[-1]

    x_flat = x.reshape(B, -1).astype(compute_dtype)  # (B, k*dim) -- streamed unpadded
    kdim = x_flat.shape[1]

    t = jnp.asarray(t)
    if t.ndim == 0:                                  # t[None].expand(B)[..., None]
        t_col = jnp.full((B, 1), t, dtype=jnp.float32)
    else:
        t_col = t.reshape(B, 1).astype(jnp.float32)

    depth = len(params)
    out_dim = params[-1][0].shape[1]

    # Split W0 into the x-part and the t-row; keep everything unpadded.
    w0, b0 = params[0]
    wbs = [w0[:kdim].astype(compute_dtype),                      # (k*dim, h0)
           w0[kdim:kdim + 1].astype(jnp.float32),                # (1, h0) t-row
           b0.reshape(1, -1).astype(jnp.float32)]                # (1, h0)
    for (w, b) in params[1:]:
        wbs += [w.astype(compute_dtype), b.reshape(1, -1).astype(jnp.float32)]

    sub = 16 if compute_dtype == jnp.bfloat16 else 8
    tb = _choose_batch_tile(B, block_b, sub)
    grid = (pl.cdiv(B, tb),)                          # no batch padding; ragged last
                                                      # block is masked by Pallas

    in_specs = [pl.BlockSpec((tb, kdim), lambda i: (i, 0)),
                pl.BlockSpec((tb, 1), lambda i: (i, 0))]
    for arr in wbs:                                   # constant index_map: resident
        in_specs.append(pl.BlockSpec(arr.shape, lambda i: (0, 0)))

    kernel = functools.partial(_product_mlp_kernel, depth=depth,
                               activation=activation)
    out = pl.pallas_call(
        kernel,
        out_shape=jax.ShapeDtypeStruct((B, out_dim), jnp.float32),
        grid=grid,
        in_specs=in_specs,
        out_specs=pl.BlockSpec((tb, out_dim), lambda i: (i, 0)),
        compiler_params=pltpu.CompilerParams(
            dimension_semantics=("parallel",)),
    )(x_flat, t_col, *wbs)

    final_last = dim - 1 if tangent else dim          # tangent-space output dim
    return out.reshape(x.shape[:-1] + (final_last,))


def _reference(x, t, params, tangent: bool, activation: str):
    """Pure-JAX transcription of ProductMLP.forward for the correctness check."""
    B = x.shape[0]
    x_flat = x.reshape(B, -1).astype(jnp.float32)
    t = jnp.asarray(t, dtype=jnp.float32)
    t_col = jnp.broadcast_to(t, (B, 1)) if t.ndim == 0 else t.reshape(B, 1)
    h = jnp.concatenate([x_flat, t_col], axis=-1)
    act = _ACTIVATIONS[activation]
    for i, (w, b) in enumerate(params):
        h = jnp.dot(h, w.astype(jnp.float32),
                    precision=jax.lax.Precision.HIGHEST) + b.reshape(1, -1)
        if i < len(params) - 1:
            h = act(h)
    last = x.shape[-1] - 1 if tangent else x.shape[-1]
    return h.reshape(x.shape[:-1] + (last,))


if __name__ == "__main__":
    # Small shapes consistent with ProductMLP: k=3 simplices of dim=4,
    # hidden=32, depth=3, batch=20 (exercises a 2-step grid with a ragged
    # final block), scalar timestep t (exercises the expand path).
    DIM, K, HIDDEN, DEPTH = 4, 3, 32, 3
    B = 20
    ACT = "relu"
    TANGENT = False

    key = jax.random.PRNGKey(0)
    keys = jax.random.split(key, 2 * DEPTH + 1)
    x = jax.random.normal(keys[0], (B, K, DIM), dtype=jnp.float32)
    t = jnp.asarray(0.37, dtype=jnp.float32)           # scalar timestep

    in_features = K * DIM + 1
    params = []
    fan_in = in_features
    for i in range(DEPTH):
        fan_out = HIDDEN if i < DEPTH - 1 else K * (DIM - 1 if TANGENT else DIM)
        w = jax.random.normal(keys[2 * i + 1], (fan_in, fan_out),
                              dtype=jnp.float32) * (1.0 / jnp.sqrt(fan_in))
        b = jax.random.normal(keys[2 * i + 2], (fan_out,),
                              dtype=jnp.float32) * 0.1
        params.append((w, b))
        fan_in = fan_out

    ref = _reference(x, t, params, TANGENT, ACT)

    # f32 path (default): exact parity with the PyTorch module's semantics.
    out = product_mlp_forward(x, t, params, tangent=TANGENT, activation=ACT)
    out = jax.block_until_ready(out)
    assert out.shape == ref.shape == (B, K, DIM), out.shape
    assert jnp.allclose(out, ref, atol=1e-3, rtol=1e-3), \
        float(jnp.max(jnp.abs(out - ref)))

    # bf16-streamed path (halves HBM bytes, bf16 MXU passes); f32 accumulation.
    out_bf16 = product_mlp_forward(x, t, params, tangent=TANGENT,
                                   activation=ACT, compute_dtype=jnp.bfloat16)
    out_bf16 = jax.block_until_ready(out_bf16)
    assert out_bf16.shape == ref.shape
    assert jnp.allclose(out_bf16, ref, atol=5e-2, rtol=5e-2), \
        float(jnp.max(jnp.abs(out_bf16 - ref)))

    print("KERNEL_OK")
</pallas_src>

<mosaic_0001>
module attributes {stable_mosaic.version = 11 : i64} {
  func.func @_product_mlp_kernel(%arg0: i32, %arg1: memref<16x12xf32, #tpu.memory_space<vmem>>, %arg2: memref<16x1xf32, #tpu.memory_space<vmem>>, %arg3: memref<12x32xf32, #tpu.memory_space<vmem>>, %arg4: memref<1x32xf32, #tpu.memory_space<vmem>>, %arg5: memref<1x32xf32, #tpu.memory_space<vmem>>, %arg6: memref<32x32xf32, #tpu.memory_space<vmem>>, %arg7: memref<1x32xf32, #tpu.memory_space<vmem>>, %arg8: memref<32x12xf32, #tpu.memory_space<vmem>>, %arg9: memref<1x12xf32, #tpu.memory_space<vmem>>, %arg10: memref<16x12xf32, #tpu.memory_space<vmem>>) attributes {dimension_semantics = [#tpu.dimension_semantics<parallel>], iteration_bounds = array<i64: 2>, scalar_prefetch = 0 : i64, scratch_operands = 0 : i64, tpu.core_type = #tpu.core_type<tc>, window_params = [{transform_indices = @transform_0, window_bounds = array<i64: 16, 12>}, {transform_indices = @transform_1, window_bounds = array<i64: 16, 1>}, {pipeline_mode = #tpu.pipeline_mode<synchronous>, transform_indices = @transform_2, window_bounds = array<i64: 12, 32>}, {pipeline_mode = #tpu.pipeline_mode<synchronous>, transform_indices = @transform_3, window_bounds = array<i64: 1, 32>}, {pipeline_mode = #tpu.pipeline_mode<synchronous>, transform_indices = @transform_4, window_bounds = array<i64: 1, 32>}, {pipeline_mode = #tpu.pipeline_mode<synchronous>, transform_indices = @transform_5, window_bounds = array<i64: 32, 32>}, {pipeline_mode = #tpu.pipeline_mode<synchronous>, transform_indices = @transform_6, window_bounds = array<i64: 1, 32>}, {pipeline_mode = #tpu.pipeline_mode<synchronous>, transform_indices = @transform_7, window_bounds = array<i64: 32, 12>}, {pipeline_mode = #tpu.pipeline_mode<synchronous>, transform_indices = @transform_8, window_bounds = array<i64: 1, 12>}, {transform_indices = @transform_9, window_bounds = array<i64: 16, 12>}]} {
    %c0 = arith.constant 0 : index
    %c0_0 = arith.constant 0 : index
    %0 = vector.load %arg1[%c0, %c0_0] : memref<16x12xf32, #tpu.memory_space<vmem>>, vector<16x12xf32>
    %c0_1 = arith.constant 0 : index
    %c0_2 = arith.constant 0 : index
    %1 = vector.load %arg2[%c0_1, %c0_2] : memref<16x1xf32, #tpu.memory_space<vmem>>, vector<16x1xf32>
    %c0_3 = arith.constant 0 : index
    %c0_4 = arith.constant 0 : index
    %2 = vector.load %arg3[%c0_3, %c0_4] : memref<12x32xf32, #tpu.memory_space<vmem>>, vector<12x32xf32>
    %cst = arith.constant dense<0.000000e+00> : vector<16x32xf32>
    %3 = tpu.matmul %0, %2, %cst {dimension_numbers = #tpu.dot_dimension_numbers<[1], [0], [0], [1], [0, 0, 1, 1], [], []>} : vector<16x12xf32>, vector<12x32xf32>, vector<16x32xf32> -> vector<16x32xf32>
    %c0_5 = arith.constant 0 : index
    %c0_6 = arith.constant 0 : index
    %4 = vector.load %arg4[%c0_5, %c0_6] : memref<1x32xf32, #tpu.memory_space<vmem>>, vector<1x32xf32>
    %5 = vector.broadcast %1 : vector<16x1xf32> to vector<16x32xf32>
    %6 = vector.broadcast %4 : vector<1x32xf32> to vector<16x32xf32>
    %7 = arith.mulf %5, %6 : vector<16x32xf32>
    %8 = arith.addf %3, %7 : vector<16x32xf32>
    %c0_7 = arith.constant 0 : index
    %c0_8 = arith.constant 0 : index
    %9 = vector.load %arg5[%c0_7, %c0_8] : memref<1x32xf32, #tpu.memory_space<vmem>>, vector<1x32xf32>
    %10 = vector.broadcast %9 : vector<1x32xf32> to vector<16x32xf32>
    %11 = arith.addf %8, %10 : vector<16x32xf32>
    %cst_9 = arith.constant 0.000000e+00 : f32
    %12 = vector.broadcast %cst_9 : f32 to vector<16x32xf32>
    %13 = arith.maximumf %11, %12 : vector<16x32xf32>
    %c0_10 = arith.constant 0 : index
    %c0_11 = arith.constant 0 : index
    %14 = vector.load %arg6[%c0_10, %c0_11] : memref<32x32xf32, #tpu.memory_space<vmem>>, vector<32x32xf32>
    %c0_12 = arith.constant 0 : index
    %c0_13 = arith.constant 0 : index
    %15 = vector.load %arg7[%c0_12, %c0_13] : memref<1x32xf32, #tpu.memory_space<vmem>>, vector<1x32xf32>
    %cst_14 = arith.constant dense<0.000000e+00> : vector<16x32xf32>
    %16 = tpu.matmul %13, %14, %cst_14 {dimension_numbers = #tpu.dot_dimension_numbers<[1], [0], [0], [1], [0, 0, 1, 1], [], []>} : vector<16x32xf32>, vector<32x32xf32>, vector<16x32xf32> -> vector<16x32xf32>
    %17 = vector.broadcast %15 : vector<1x32xf32> to vector<16x32xf32>
    %18 = arith.addf %16, %17 : vector<16x32xf32>
    %cst_15 = arith.constant 0.000000e+00 : f32
    %19 = vector.broadcast %cst_15 : f32 to vector<16x32xf32>
    %20 = arith.maximumf %18, %19 : vector<16x32xf32>
    %c0_16 = arith.constant 0 : index
    %c0_17 = arith.constant 0 : index
    %21 = vector.load %arg8[%c0_16, %c0_17] : memref<32x12xf32, #tpu.memory_space<vmem>>, vector<32x12xf32>
    %c0_18 = arith.constant 0 : index
    %c0_19 = arith.constant 0 : index
    %22 = vector.load %arg9[%c0_18, %c0_19] : memref<1x12xf32, #tpu.memory_space<vmem>>, vector<1x12xf32>
    %cst_20 = arith.constant dense<0.000000e+00> : vector<16x12xf32>
    %23 = tpu.matmul %20, %21, %cst_20 {dimension_numbers = #tpu.dot_dimension_numbers<[1], [0], [0], [1], [0, 0, 1, 1], [], []>} : vector<16x32xf32>, vector<32x12xf32>, vector<16x12xf32> -> vector<16x12xf32>
    %24 = vector.broadcast %22 : vector<1x12xf32> to vector<16x12xf32>
    %25 = arith.addf %23, %24 : vector<16x12xf32>
    %c0_21 = arith.constant 0 : index
    %c0_22 = arith.constant 0 : index
    %26 = vector.load %arg10[%c0_21, %c0_22] : memref<16x12xf32, #tpu.memory_space<vmem>>, vector<16x12xf32>
    tpu.vector_store %arg10[%c0_21, %c0_22], %25 {strides = array<i32>} : memref<16x12xf32, #tpu.memory_space<vmem>>, vector<16x12xf32>,
    return
  }
  func.func @transform_0(%arg0: i32) -> (i32, i32) {
    %c0_i32 = arith.constant 0 : i32
    %c0_i32_0 = arith.constant 0 : i32
    return %arg0, %c0_i32 : i32, i32
  }
  func.func @transform_1(%arg0: i32) -> (i32, i32) {
    %c0_i32 = arith.constant 0 : i32
    %c0_i32_0 = arith.constant 0 : i32
    return %arg0, %c0_i32 : i32, i32
  }
  func.func @transform_2(%arg0: i32) -> (i32, i32) {
    %c0_i32 = arith.constant 0 : i32
    %c0_i32_0 = arith.constant 0 : i32
    %c0_i32_1 = arith.constant 0 : i32
    return %c0_i32, %c0_i32_0 : i32, i32
  }
  func.func @transform_3(%arg0: i32) -> (i32, i32) {
    %c0_i32 = arith.constant 0 : i32
    %c0_i32_0 = arith.constant 0 : i32
    %c0_i32_1 = arith.constant 0 : i32
    return %c0_i32, %c0_i32_0 : i32, i32
  }
  func.func @transform_4(%arg0: i32) -> (i32, i32) {
    %c0_i32 = arith.constant 0 : i32
    %c0_i32_0 = arith.constant 0 : i32
    %c0_i32_1 = arith.constant 0 : i32
    return %c0_i32, %c0_i32_0 : i32, i32
  }
  func.func @transform_5(%arg0: i32) -> (i32, i32) {
    %c0_i32 = arith.constant 0 : i32
    %c0_i32_0 = arith.constant 0 : i32
    %c0_i32_1 = arith.constant 0 : i32
    return %c0_i32, %c0_i32_0 : i32, i32
  }
  func.func @transform_6(%arg0: i32) -> (i32, i32) {
    %c0_i32 = arith.constant 0 : i32
    %c0_i32_0 = arith.constant 0 : i32
    %c0_i32_1 = arith.constant 0 : i32
    return %c0_i32, %c0_i32_0 : i32, i32
  }
  func.func @transform_7(%arg0: i32) -> (i32, i32) {
    %c0_i32 = arith.constant 0 : i32
    %c0_i32_0 = arith.constant 0 : i32
    %c0_i32_1 = arith.constant 0 : i32
    return %c0_i32, %c0_i32_0 : i32, i32
  }
  func.func @transform_8(%arg0: i32) -> (i32, i32) {
    %c0_i32 = arith.constant 0 : i32
    %c0_i32_0 = arith.constant 0 : i32
    %c0_i32_1 = arith.constant 0 : i32
    return %c0_i32, %c0_i32_0 : i32, i32
  }
  func.func @transform_9(%arg0: i32) -> (i32, i32) {
    %c0_i32 = arith.constant 0 : i32
    %c0_i32_0 = arith.constant 0 : i32
    return %arg0, %c0_i32 : i32, i32
  }
}

</mosaic_0001>

<bundles_post_ra>
// kernel: tpu_custom_call.1
= control target key start
LH: loop header
LB: loop body
LE: loop exit
PB: predicated region body
PF: predicated region fallthrough
CT: control target
= control target key end

     0   :  { %s1276_s30 = smov 0   ;;  %s1278_s10 = smov 0   ;;  %s1412_s0 = inlined_call_operand.vmem [shape: f32[20,12], index: 0, kind: input, shape index: {}]   ;;  %s1413_s1 = inlined_call_operand.vmem [shape: f32[20,1], index: 1, kind: input, shape index: {}]   ;;  %s1414_s2 = inlined_call_operand.vmem [shape: f32[12,32], index: 2, kind: input, shape index: {}]   ;;  %s1415_s3 = inlined_call_operand.vmem [shape: f32[1,32], index: 3, kind: input, shape index: {}]   ;;  %s1416_s4 = inlined_call_operand.vmem [shape: f32[1,32], index: 4, kind: input, shape index: {}]   ;;  %s1417_s5 = inlined_call_operand.vmem [shape: f32[32,32], index: 5, kind: input, shape index: {}]   ;;  %s1418_s6 = inlined_call_operand.vmem [shape: f32[1,32], index: 6, kind: input, shape index: {}]   ;;  %s1419_s7 = inlined_call_operand.vmem [shape: f32[32,12], index: 7, kind: input, shape index: {}]   ;;  %s1420_s8 = inlined_call_operand.vmem [shape: f32[1,12], index: 8, kind: input, shape index: {}]   ;;  %s1421_s9 = inlined_call_operand.vmem [shape: f32[20,12], index: 9, kind: output, shape index: {}]  }
   0x1   :  { %s1280_s11 = smov 0  }
   0x2 LB: > { %s1289_s12 = sadd.s32 4294967295, %s1190_s11   ;;  %s1291_s13 = sadd.s32 1, %s1190_s11   ;;  %s1190_s11 = sphi %s1280_s11, %s1425_s11   ;;  %s1186_s10 = sphi %s1278_s10, %s1424_s10   ;;  %s1182_s30 = sphi %s1276_s30, %s1423_s30  }
   0x3   : > { %s222_s14 = ssub.s32 %s1190_s11, %s1291_s13  ;;  %s225_s15 = sadd.s32 1, %s1186_s10 }
   0x4   : > { %p223_p0 = scmp.eq.s32.totalorder %s222_s14, 0  ;;  %p235_p1 = scmp.ne.s32.totalorder %s1186_s10, %s1182_s30 }
   0x5   : > { %p236_p2 = scmp.eq.s32.totalorder %s1289_s12, 1  ;;  %p941_p3 = scmp.ge.s32.totalorder %s1190_s11, 1 }
   0x6   : > { %s1299_s16 = scalar_select %p223_p0, %s1186_s10, %s225_s15  }
   0x7   : > { %p1301_p4 = por %p236_p2, %p235_p1  ;;  %p315_p5 = scmp.lt.s32.totalorder %s1190_s11, 3 }
   0x9   : > { %p316_p6 = pnand %p941_p3, %p315_p5 }
   0xa   : > { %v400_v0 = vld [vmem:[%s1414_s2] sm:$0xff] (!%p316_p6)  ;;  %v401_v1 = vld [vmem:[%s1414_s2 + $0x8] sm:$0xf] (!%p316_p6)  ;;  %vm428_vm0 = vcmask (!%p316_p6), 1043456   ;;  %s1312_s22 = sshll.u32 (!%p316_p6), %s1289_s12, 1  ;;  %vm1224_vm1 = vmmov (!%p316_p6), 1  }
   0xb   : > { %319 = sbr.rel (%p316_p6) target bundleno = 727 (0x2d7), region = 56  ;;  %v1023_v2 = vpack.c.bf16 (!%p316_p6), %v401_v1, %v400_v0  ;;  %vm1024_vm2 = vmpackc.low (!%p316_p6), %vm428_vm0, %vm1224_vm1  ;;  %p368_p7 = scmp.lt.s32.totalorder (!%p316_p6), %s1312_s22, 2  ;;  %v1225_v3 = vmov (!%p316_p6), 0   ;;  %vm421_vm3 = vcmask (!%p316_p6), 97280   ;;  %v518_v8 = vld [vmem:[%s1417_s5] sm:$0xff] (!%p316_p6)  ;;  %v519_v9 = vld [vmem:[%s1417_s5 + $0x8] sm:$0xff] (!%p316_p6) }
   0xc   : > { %1135 = vset.pattern.permute.xlu0 (!%p316_p6), %v1225_v3  ;;  %v1029_v10 = vpack.c.bf16 (!%p316_p6), %v519_v9, %v518_v8  ;;  %v520_v11 = vld [vmem:[%s1417_s5 + $0x10] sm:$0xff] (!%p316_p6)  ;;  %v521_v12 = vld [vmem:[%s1417_s5 + $0x18] sm:$0xff] (!%p316_p6)  ;;  %v613_v14 = vld [vmem:[%s1419_s7] sm:$0xff] (!%p316_p6)  ;;  %vm529_vm4 = vcmask (!%p316_p6), 261120   ;;  %s360_s25 = sand.u32 (!%p316_p6), 1, %s1182_s30  }
   0xd   : > { %1025 = vmatprep.subr.msk.bf16.mxu0 (!%p316_p6), %vm1024_vm2, %v1023_v2  ;;  %v1033_v13 = vpack.c.bf16 (!%p316_p6), %v521_v12, %v520_v11  ;;  %v614_v15 = vld [vmem:[%s1419_s7 + $0x8] sm:$0xff] (!%p316_p6)  ;;  %v947_v18 = vld [vmem:[%s1415_s3] ss:$0 sm:$0xff] (!%p316_p6)  ;;  %v615_v31 = vld [vmem:[%s1419_s7 + $0x10] sm:$0xff] (!%p316_p6)  ;;  %s942_s26 = sshll.u32 (!%p316_p6), %s360_s25, 4 }
   0xe   : > { %1028 = vmatpush3.bf16.msk.msra.mxu0 (!%p316_p6), %vm1024_vm2, %v1023_v2  ;;  %1030 = vmatprep.subr.bf16.mxu1 (!%p316_p6), %v1029_v10  ;;  %v1037_v16 = vpack.c.bf16 (!%p316_p6), %v614_v15, %v613_v14  ;;  %v951_v23 = vld [vmem:[%s1416_s4] ss:$0 sm:$0xff] (!%p316_p6)  ;;  %v616_v32 = vld [vmem:[%s1419_s7 + $0x18] sm:$0xff] (!%p316_p6)  ;;  %s1365_s29 = scalar_lea.vmem (!%p316_p6), [#allocation2], %s942_s26  }
   0xf   : > { %1032 = vmatpush3.bf16.msra.mxu1 (!%p316_p6), %v1029_v10  ;;  %v1041_v33 = vpack.c.bf16 (!%p316_p6), %v616_v32, %v615_v31  ;;  %v952_v34 = vld [vmem:[%s1418_s6] ss:$0 sm:$0xff] (!%p316_p6) }
  0x10   : > { %1034 = vmatprep.subr.bf16.mxu1 (!%p316_p6), %v1033_v13  ;;  %1038 = vmatprep.subr.bf16.mxu0 (!%p316_p6), %v1037_v16  ;;  %v955_v41 = vld [vmem:[%s1420_s8] ss:$0 sm:$0xff] (!%p316_p6) }
  0x12   : > { %s369_s23 = scalar_select %p368_p7, %s1312_s22, 2 }
  0x13   : > { %1036 = vmatpush3.bf16.msra.mxu1 %v1033_v13  ;;  %s715_s30 = ssub.s32 (%p1301_p4), 3, %s1312_s22 }
  0x14   : > { %s944_s24 = sshll.u32 %s369_s23, 3  ;;  %p716_p8 = scmp.lt.s32.totalorder (%p1301_p4), %s715_s30, 2 }
  0x15   : > { %s371_s27 = scalar_lea.vmem %s1412_s0, %s944_s24  ;;  %s385_s11 = scalar_lea.vmem %s1413_s1, %s944_s24 }
  0x16   : > { %v396_v4 = vld [vmem:[%s371_s27] sm:$0xff]  ;;  %v397_v5 = vld [vmem:[%s371_s27 + $0x8] sm:$0xff] }
  0x17   : > { %v398_v6 = vld [vmem:[%s385_s11] sm:$0xff]  ;;  %998 = vmatprep.mubr.msk.f32.mxu0 %vm421_vm3, %v396_v4  ;;  %v399_v7 = vld [vmem:[%s385_s11 + $0x8] sm:$0xff]  ;;  %s975_s11 = sshll.u32 (%p1301_p4), %s1289_s12, 4 }
  0x18   : > { %405 = vperm.xlu0 %1135, %v398_v6   ;;  %999 = vmatmul.mubr.msk.f32.vlgmr.msra.gmra.mrb[0].mxu0 %vm421_vm3, %v397_v5  ;;  %s1378_s18 = scalar_lea.vmem (%p1301_p4), %s1421_s9, %s975_s11  }
  0x19   : > { %1040 = vmatpush3.bf16.msra.mxu0 %v1037_v16 }
  0x1a   : > { %1042 = vmatprep.subr.bf16.mxu0 %v1041_v33 }
  0x1c   : > { %410 = vperm.xlu0 %1135, %v399_v7  }
  0x1d   : > { %1044 = vmatpush3.bf16.msra.mxu0 %v1041_v33 }
  0x97   : > { %v406_v17 = vpop.permute.xlu0 %405 }
  0x98   : > { %v419_v21 = vmul.f32 %v947_v18, %v406_v17 }
  0x9b   : > { %v411_v19 = vpop.permute.xlu0 %410 }
  0x9c   : > { %v420_v20 = vmul.f32 %v947_v18, %v411_v19 }
  0xeb   : > { %v1000_v22 = vpop.f32.mrb[0].mxu0 }
  0xec   : > { %v504_v24 = vadd.f32 %v1000_v22, %v420_v20  ;;  %v498_v25 = vpop.f32.mrb[1].mxu0 }
  0xed   : > { %v499_v26 = vadd.f32 %v498_v25, %v419_v21 }
  0xee   : > { %v515_v27 = vadd.f32 %v951_v23, %v504_v24 }
  0xef   : > { %v514_v28 = vadd.f32 %v951_v23, %v499_v26 }
  0xf0   : > { %v517_v30 = vmax.f32 %v515_v27, 0.0 }
  0xf1   : > { %v516_v29 = vmax.f32 %v514_v28, 0.0 }
  0xf3   : > { %1009 = vmatprep.mubr.msk.f32.mxu1 %vm529_vm4, %v516_v29 }
  0xf4   : > { %1010 = vmatmul.mubr.msk.f32.vlgmr.msra.gmra.mrb[0].mxu1 %vm529_vm4, %v517_v30 }
 0x1c7   : > { %v1011_v35 = vpop.f32.mrb[0].mxu1 }
 0x1c8   : > { %v608_v36 = vadd.f32 %v1011_v35, %v952_v34  ;;  %v602_v37 = vpop.f32.mrb[1].mxu1 }
 0x1c9   : > { %v603_v38 = vadd.f32 %v952_v34, %v602_v37 }
 0x1ca   : > { %v612_v40 = vmax.f32 %v608_v36, 0.0 }
 0x1cb   : > { %v611_v39 = vmax.f32 %v603_v38, 0.0 }
 0x1cd   : > { %1020 = vmatprep.mubr.msk.f32.mxu0 %vm529_vm4, %v611_v39 }
 0x1ce   : > { %1021 = vmatmul.mubr.msk.f32.vlgmr.msra.gmra.mrb[2].mxu0 %vm529_vm4, %v612_v40 }
 0x29f   : > { %713 = sbr.rel (!%p1301_p4) target bundleno = 727 (0x2d7), region = 60 }
 0x2a1   : > { %v1022_v42 = vpop.f32.mrb[2].mxu0 }
 0x2a2   : > { %v702_v43 = vadd.f32 %v1022_v42, %v955_v41  ;;  %v696_v44 = vpop.f32.mrb[3].mxu0 }
 0x2a3   : > { %v697_v45 = vadd.f32 %v955_v41, %v696_v44 }
 0x2a4   : > { %706 = vst.msk [vmem:[%s1365_s29 + $0x8] sm:$0xff] %vm421_vm3, %v702_v43 }
 0x2a5   : > { %705 = vst.msk [vmem:[%s1365_s29] sm:$0xff] %vm421_vm3, %v697_v45 }
 0x2a6   : > { %s1427_s30 = smov (!%p716_p8, %s715_s30), 2 }
 0x2a7   : > { %s960_s19 = sshll.u32 %s1427_s30, 7 }
 0x2a8   : > { %p963_p9 = scmp.eq.s32.totalorder %s960_s19, 0 }
 0x2a9   : > { %s1384_s20 = sshrl.u32 (!%p963_p9), %s1427_s30, 1 }
 0x2aa   : > { %724 = sbr.rel (%p963_p9) target bundleno = 727 (0x2d7), region = 64  ;;  %p964_p10 = scmp.le.s32.totalorder (!%p963_p9), %s1384_s20, 0 }
 0x2b1   : > { %888 = sbr.rel (%p964_p10) target bundleno = 706 (0x2c2), region = 143  ;;  %s1192_s12 = smov (!%p964_p10), %s1378_s18  }
 0x2b2   : > { %s1196_s17 = smov (!%p964_p10), %s1365_s29   ;;  %s1200_s22 = smov (!%p964_p10), 0  }
 0x2b3   : > { %s1204_s21 = smov (!%p964_p10), 0  }
 0x2b8 LB: >> { %v788_v46 = vld [vmem:[%s1198_s17] sm:$0xff]  ;;  %v790_v47 = vld [vmem:[%s1198_s17 + $0x8] sm:$0xff]  ;;  %s792_s23 = sadd.s32 1, %s1202_s22  ;;  %s782_s21 = sadd.s32 1, %s1206_s21   ;;  %s1206_s21 = sphi %s1204_s21, %s782_s21   ;;  %s1202_s22 = sphi %s1200_s22, %s1201_s22   ;;  %s1198_s17 = sphi %s1196_s17, %s797_s17   ;;  %s1194_s12 = sphi %s1192_s12, %s798_s12  }
 0x2b9   : >> { %789 = vst [vmem:[%s1194_s12] sm:$0xff] %v788_v46  ;;  %791 = vst [vmem:[%s1194_s12 + $0x8] sm:$0xff] %v790_v47  ;;  %p793_p11 = scmp.ge.s32.totalorder %s792_s23, %s1384_s20  ;;  %p781_p12 = scmp.ge.s32.totalorder %s782_s21, %s1384_s20 }
 0x2bb   : >> { %s1429_s23 = smov (%p793_p11, %s792_s23), 0  ;;  %784 = sbr.rel (!%p781_p12) target bundleno = 696 (0x2b8), region = 149 }
 0x2bc   : >> { %s965_s24 = sshll.u32 %s1429_s23, 4  ;;  %s1201_s22 = smov %s1429_s23  }
 0x2bd   : >> { %s797_s17 = scalar_lea.vmem %s1365_s29, %s965_s24 [#allocation2]   ;;  %s798_s12 = scalar_lea.vmem %s1378_s18, %s965_s24  }
 0x2c2 PF: > { %s1394_s25 = sand.u32 1, %s1427_s30   ;;  %s976_s26 = sshll.u32 %s1384_s20, 4 }
 0x2c3   : > { %s803_s27 = scalar_lea.vmem %s1365_s29, %s976_s26 [#allocation2]   ;;  %s805_s28 = scalar_lea.vmem %s1378_s18, %s976_s26  }
 0x2c4   : > { %p970_p13 = scmp.le.s32.totalorder %s1394_s25, 0 }
 0x2c5   : > { %s1208_s11 = smov (!%p970_p13), %s805_s28   ;;  %s1212_s14 = smov (!%p970_p13), %s803_s27  }
 0x2c6   : > { %902 = sbr.rel (%p970_p13) target bundleno = 727 (0x2d7), region = 154  ;;  %s1216_s15 = smov (!%p970_p13), 0  }
 0x2c7   : > { %s1220_s19 = smov (!%p970_p13), 0  }
 0x2cd LB: >> { %v815_v48 = vld [vmem:[%s1214_s14] sm:$0xff]  ;;  %s817_s30 = sadd.s32 1, %s1218_s15  ;;  %s809_s19 = sadd.s32 1, %s1222_s19   ;;  %s1222_s19 = sphi %s1220_s19, %s809_s19   ;;  %s1218_s15 = sphi %s1216_s15, %s1217_s15   ;;  %s1214_s14 = sphi %s1212_s14, %s822_s14   ;;  %s1210_s11 = sphi %s1208_s11, %s823_s11  }
 0x2ce   : >> { %816 = vst [vmem:[%s1210_s11] sm:$0xff] %v815_v48  ;;  %p818_p0 = scmp.ge.s32.totalorder %s817_s30, %s1394_s25  ;;  %p808_p1 = scmp.ge.s32.totalorder %s809_s19, %s1394_s25 }
 0x2d0   : >> { %s1431_s30 = smov (%p818_p0, %s817_s30), 0  ;;  %811 = sbr.rel (!%p808_p1) target bundleno = 717 (0x2cd), region = 160 }
 0x2d1   : >> { %s971_s29 = sshll.u32 %s1431_s30, 3  ;;  %s1217_s15 = smov %s1431_s30  }
 0x2d2   : >> { %s822_s14 = scalar_lea.vmem %s803_s27, %s971_s29 [#allocation2]   ;;  %s823_s11 = scalar_lea.vmem %s805_s28, %s971_s29  }
 0x2d7 PF: > { %p16_p2 = scmp.ge.s32.totalorder %s1291_s13, 4   ;;  %s1423_s30 = smov %s1186_s10 }
 0x2d8   : > { %s1424_s10 = smov %s1299_s16  ;;  %s1425_s11 = smov %s1291_s13 }
 0x2d9   :  { %18 = sbr.rel (!%p16_p2) target bundleno = 2 (0x2), region = 171 }

</bundles_post_ra>
